<compile_context>
chip_gen: v7x
topology: tpu7x:2x2x1
jax: 0.10.0
libtpu: 0.0.40
codegen_flags: <defaults>
</compile_context>

<pallas_src>
import jax
import jax.numpy as jnp
from jax.experimental import pallas as pl
from jax.experimental.pallas import tpu as pltpu


def _round_up(x, m):
    return (x + m - 1) // m * m


def order_predictor_kernel(f_ref, wd_ref, bd_ref, wf_ref, bf_ref, out_ref):
    # f_ref:  (TB, 3*Dp)   lane-dense [f0 | f1 | f2]
    # wd_ref: (3*Dp, 3*Dp) block-structured discriminator weights
    # bd_ref: (1, 3*Dp)    [b01 | b02 | b12]
    # wf_ref: (3*Dp, 128)  final weights, columns 6..128 zero
    # bf_ref: (1, 128)     final bias, columns 6..128 zero
    res = jnp.dot(f_ref[...], wd_ref[...], preferred_element_type=jnp.float32)
    res = res + bd_ref[...]                      # (TB, 3*Dp) == [res_01|res_02|res_12]
    out = jnp.dot(res, wf_ref[...], preferred_element_type=jnp.float32)
    out_ref[...] = (out + bf_ref[...]).astype(out_ref.dtype)


def prepare_params(params, model_dim, *, n_final_pad=128):
    """One-time conversion of PyTorch-layout weights into kernel layout."""
    D = model_dim
    Dp = _round_up(D, 128)
    NF = n_final_pad

    def pad_block(w):                    # (D, D) -> (Dp, Dp)
        return jnp.pad(w, ((0, Dp - D), (0, Dp - D)))

    def pad_bias(b):                     # (D,) -> (Dp,)
        return jnp.pad(b, (0, Dp - D))

    w01_t = params["disc_w0"].T          # (2D, D) == W.T
    w02_t = params["disc_w1"].T
    w12_t = params["disc_w2"].T
    Z = jnp.zeros((Dp, Dp), jnp.float32)

    # rows = input position (f0, f1, f2); cols = output (res_01, res_02, res_12)
    row0 = jnp.concatenate([pad_block(w01_t[:D]), pad_block(w02_t[:D]), Z], axis=1)
    row1 = jnp.concatenate([pad_block(w01_t[D:]), Z, pad_block(w12_t[:D])], axis=1)
    row2 = jnp.concatenate([Z, pad_block(w02_t[D:]), pad_block(w12_t[D:])], axis=1)
    wd = jnp.concatenate([row0, row1, row2], axis=0)                 # (3Dp, 3Dp)

    bd = jnp.concatenate(
        [pad_bias(params["disc_b0"]),
         pad_bias(params["disc_b1"]),
         pad_bias(params["disc_b2"])]).reshape(1, 3 * Dp)

    wf_t = params["final_w"].T                                       # (3D, 6)
    wf_blocks = [
        jnp.pad(wf_t[i * D:(i + 1) * D, :], ((0, Dp - D), (0, NF - 6)))
        for i in range(3)
    ]
    wf = jnp.concatenate(wf_blocks, axis=0)                          # (3Dp, 128)
    bf = jnp.pad(params["final_b"], (0, NF - 6)).reshape(1, NF)

    return {"wd": wd.astype(jnp.float32), "bd": bd.astype(jnp.float32),
            "wf": wf.astype(jnp.float32), "bf": bf.astype(jnp.float32),
            "D": D, "Dp": Dp, "NF": NF}


def order_predictor(features, kp):
    """features: (B, 3, D). kp: output of prepare_params()."""
    B, three, D = features.shape
    assert three == 3 and D == kp["D"]
    Dp, NF = kp["Dp"], kp["NF"]

    # --- batch tile sizing (keep resident weights + double-buffered tiles in VMEM)
    weight_bytes = 4 * (kp["wd"].size + kp["wf"].size + kp["bd"].size + kp["bf"].size)
    per_row_bytes = 4 * (3 * Dp + NF) * 2            # in + out tiles, double-buffered
    budget = 48 * 1024 * 1024 - weight_bytes
    max_tb = max(8, (budget // max(per_row_bytes, 1)) // 8 * 8)
    TB = int(min(512, max_tb, _round_up(B, 8)))
    TB = max(8, TB - TB % 8)
    B_pad = _round_up(B, TB)

    # --- lane-dense layout: pad D -> Dp per position, flatten to (B_pad, 3*Dp)
    f = jnp.pad(features, ((0, B_pad - B), (0, 0), (0, Dp - D)))
    f = f.reshape(B_pad, 3 * Dp).astype(jnp.float32)

    vmem_est = weight_bytes + TB * per_row_bytes
    compiler_params = pltpu.CompilerParams(
        dimension_semantics=("parallel",),           # megacore on v7x; harmless elsewhere
        vmem_limit_bytes=int(min(max(2 * vmem_est, 32 * 1024 * 1024),
                                 64 * 1024 * 1024)),
    )

    out_pad = pl.pallas_call(
        order_predictor_kernel,
        out_shape=jax.ShapeDtypeStruct((B_pad, NF), jnp.float32),
        grid=(B_pad // TB,),
        in_specs=[
            pl.BlockSpec((TB, 3 * Dp), lambda i: (i, 0)),        # feature tile
            pl.BlockSpec((3 * Dp, 3 * Dp), lambda i: (0, 0)),    # resident weights
            pl.BlockSpec((1, 3 * Dp), lambda i: (0, 0)),
            pl.BlockSpec((3 * Dp, NF), lambda i: (0, 0)),
            pl.BlockSpec((1, NF), lambda i: (0, 0)),
        ],
        out_specs=pl.BlockSpec((TB, NF), lambda i: (i, 0)),
        compiler_params=compiler_params,
    )(f, kp["wd"], kp["bd"], kp["wf"], kp["bf"])

    return out_pad[:B, :6].astype(features.dtype)


def order_predictor_ref(features, params):
    f0, f1, f2 = features[:, 0], features[:, 1], features[:, 2]
    r01 = jnp.concatenate([f0, f1], -1) @ params["disc_w0"].T + params["disc_b0"]
    r02 = jnp.concatenate([f0, f2], -1) @ params["disc_w1"].T + params["disc_b1"]
    r12 = jnp.concatenate([f1, f2], -1) @ params["disc_w2"].T + params["disc_b2"]
    res = jnp.concatenate([r01, r02, r12], -1)
    return res @ params["final_w"].T + params["final_b"]


def init_params(key, model_dim):
    keys = jax.random.split(key, 8)
    p = {}
    for i in range(3):
        p[f"disc_w{i}"] = jax.random.normal(
            keys[2 * i], (model_dim, 2 * model_dim), jnp.float32) * 0.02
        p[f"disc_b{i}"] = jax.random.normal(
            keys[2 * i + 1], (model_dim,), jnp.float32) * 0.02
    p["final_w"] = jax.random.normal(keys[6], (6, 3 * model_dim), jnp.float32) * 0.02
    p["final_b"] = jax.random.normal(keys[7], (6,), jnp.float32) * 0.02
    return p


if __name__ == "__main__":
    B, D = 8, 32
    key = jax.random.PRNGKey(0)
    k_feat, k_param = jax.random.split(key)
    features = jax.random.normal(k_feat, (B, 3, D), jnp.float32)
    params = init_params(k_param, D)

    kparams = prepare_params(params, D)          # one-time weight re-layout
    out = order_predictor(features, kparams)
    out = jax.block_until_ready(out)

    ref = order_predictor_ref(features, params)
    assert out.shape == (B, 6)
    assert jnp.allclose(out, ref, atol=1e-4, rtol=1e-4)
    print("KERNEL_OK")
</pallas_src>

<mosaic_0001>
module attributes {stable_mosaic.version = 11 : i64} {
  func.func @order_predictor_kernel(%arg0: i32, %arg1: memref<8x384xf32, #tpu.memory_space<vmem>>, %arg2: memref<384x384xf32, #tpu.memory_space<vmem>>, %arg3: memref<1x384xf32, #tpu.memory_space<vmem>>, %arg4: memref<384x128xf32, #tpu.memory_space<vmem>>, %arg5: memref<1x128xf32, #tpu.memory_space<vmem>>, %arg6: memref<8x128xf32, #tpu.memory_space<vmem>>) attributes {dimension_semantics = [#tpu.dimension_semantics<parallel>], iteration_bounds = array<i64: 1>, scalar_prefetch = 0 : i64, scratch_operands = 0 : i64, tpu.core_type = #tpu.core_type<tc>, window_params = [{transform_indices = @transform_0, window_bounds = array<i64: 8, 384>}, {pipeline_mode = #tpu.pipeline_mode<synchronous>, transform_indices = @transform_1, window_bounds = array<i64: 384, 384>}, {pipeline_mode = #tpu.pipeline_mode<synchronous>, transform_indices = @transform_2, window_bounds = array<i64: 1, 384>}, {pipeline_mode = #tpu.pipeline_mode<synchronous>, transform_indices = @transform_3, window_bounds = array<i64: 384, 128>}, {pipeline_mode = #tpu.pipeline_mode<synchronous>, transform_indices = @transform_4, window_bounds = array<i64: 1, 128>}, {transform_indices = @transform_5, window_bounds = array<i64: 8, 128>}]} {
    %c0 = arith.constant 0 : index
    %c0_0 = arith.constant 0 : index
    %0 = vector.load %arg1[%c0, %c0_0] : memref<8x384xf32, #tpu.memory_space<vmem>>, vector<8x384xf32>
    %c0_1 = arith.constant 0 : index
    %c0_2 = arith.constant 0 : index
    %1 = vector.load %arg2[%c0_1, %c0_2] : memref<384x384xf32, #tpu.memory_space<vmem>>, vector<384x384xf32>
    %cst = arith.constant dense<0.000000e+00> : vector<8x384xf32>
    %2 = tpu.matmul %0, %1, %cst {dimension_numbers = #tpu.dot_dimension_numbers<[1], [0], [0], [1], [0, 0, 1, 1], [], []>} : vector<8x384xf32>, vector<384x384xf32>, vector<8x384xf32> -> vector<8x384xf32>
    %c0_3 = arith.constant 0 : index
    %c0_4 = arith.constant 0 : index
    %3 = vector.load %arg3[%c0_3, %c0_4] : memref<1x384xf32, #tpu.memory_space<vmem>>, vector<1x384xf32>
    %4 = vector.broadcast %3 : vector<1x384xf32> to vector<8x384xf32>
    %5 = arith.addf %2, %4 : vector<8x384xf32>
    %c0_5 = arith.constant 0 : index
    %c0_6 = arith.constant 0 : index
    %6 = vector.load %arg4[%c0_5, %c0_6] : memref<384x128xf32, #tpu.memory_space<vmem>>, vector<384x128xf32>
    %cst_7 = arith.constant dense<0.000000e+00> : vector<8x128xf32>
    %7 = tpu.matmul %5, %6, %cst_7 {dimension_numbers = #tpu.dot_dimension_numbers<[1], [0], [0], [1], [0, 0, 1, 1], [], []>} : vector<8x384xf32>, vector<384x128xf32>, vector<8x128xf32> -> vector<8x128xf32>
    %c0_8 = arith.constant 0 : index
    %c0_9 = arith.constant 0 : index
    %8 = vector.load %arg5[%c0_8, %c0_9] : memref<1x128xf32, #tpu.memory_space<vmem>>, vector<1x128xf32>
    %9 = vector.broadcast %8 : vector<1x128xf32> to vector<8x128xf32>
    %10 = arith.addf %7, %9 : vector<8x128xf32>
    %c0_10 = arith.constant 0 : index
    %c0_11 = arith.constant 0 : index
    %11 = vector.load %arg6[%c0_10, %c0_11] : memref<8x128xf32, #tpu.memory_space<vmem>>, vector<8x128xf32>
    tpu.vector_store %arg6[%c0_10, %c0_11], %10 {strides = array<i32>} : memref<8x128xf32, #tpu.memory_space<vmem>>, vector<8x128xf32>,
    return
  }
  func.func @transform_0(%arg0: i32) -> (i32, i32) {
    %c0_i32 = arith.constant 0 : i32
    %c0_i32_0 = arith.constant 0 : i32
    return %arg0, %c0_i32 : i32, i32
  }
  func.func @transform_1(%arg0: i32) -> (i32, i32) {
    %c0_i32 = arith.constant 0 : i32
    %c0_i32_0 = arith.constant 0 : i32
    %c0_i32_1 = arith.constant 0 : i32
    return %c0_i32, %c0_i32_0 : i32, i32
  }
  func.func @transform_2(%arg0: i32) -> (i32, i32) {
    %c0_i32 = arith.constant 0 : i32
    %c0_i32_0 = arith.constant 0 : i32
    %c0_i32_1 = arith.constant 0 : i32
    return %c0_i32, %c0_i32_0 : i32, i32
  }
  func.func @transform_3(%arg0: i32) -> (i32, i32) {
    %c0_i32 = arith.constant 0 : i32
    %c0_i32_0 = arith.constant 0 : i32
    %c0_i32_1 = arith.constant 0 : i32
    return %c0_i32, %c0_i32_0 : i32, i32
  }
  func.func @transform_4(%arg0: i32) -> (i32, i32) {
    %c0_i32 = arith.constant 0 : i32
    %c0_i32_0 = arith.constant 0 : i32
    %c0_i32_1 = arith.constant 0 : i32
    return %c0_i32, %c0_i32_0 : i32, i32
  }
  func.func @transform_5(%arg0: i32) -> (i32, i32) {
    %c0_i32 = arith.constant 0 : i32
    %c0_i32_0 = arith.constant 0 : i32
    return %arg0, %c0_i32 : i32, i32
  }
}

</mosaic_0001>

<bundles_post_ra>
// kernel: tpu_custom_call.1
= control target key start
LH: loop header
LB: loop body
LE: loop exit
PB: predicated region body
PF: predicated region fallthrough
CT: control target
= control target key end

     0   :  { %10 = vsyncpa [#allocation3], 0  ;;  %s1330_s0 = inlined_call_operand.hbm [shape: f32[8,384], index: 0, kind: input, shape index: {}]   ;;  %s1331_s1 = inlined_call_operand.hbm [shape: f32[384,384], index: 1, kind: input, shape index: {}]   ;;  %s1332_s2 = inlined_call_operand.vmem [shape: f32[1,384], index: 2, kind: input, shape index: {}]   ;;  %s1333_s3 = inlined_call_operand.hbm [shape: f32[384,128], index: 3, kind: input, shape index: {}]   ;;  %s1334_s4 = inlined_call_operand.vmem [shape: f32[1,128], index: 4, kind: input, shape index: {}]   ;;  %s1335_s5 = inlined_call_operand.hbm [shape: f32[8,128], index: 5, kind: output, shape index: {}]  }
   0x1   :  { %11 = vsyncpa [#allocation6], 0 }
   0x2   :  { %12 = vsyncpa [#allocation4], 0  ;;  %s1210_s18 = smov [#allocation5]   ;;  %s1116_s22 = scalar_lea.hbm %s1331_s1, 18432 }
   0x3   :  { %s28_s19 = sshll.u32 %s1210_s18, 4  ;;  %p1117_p0 = scmp.ne.s32.totalorder %s1331_s1, %s1116_s22  ;;  %s29_s19 = int_to_ptr.vmem [resolvable:$true] %s28_s19 }
   0x4   :  { %p1120_p1 = scmp.lt.u32.totalorder %s1116_s22, %s1331_s1 }
   0x6   :  { %p1122_p2 = pnand %p1120_p1, %p1117_p0 }
   0x8   :  { %1125 = shalt.err (!%p1122_p2)
}
   0x9   :  { %s1126_s27 = scalar_lea.vmem %s29_s19, 18432  ;;  %p1131_p4 = scmp.lt.s32.totalorder %s29_s19, %s29_s19 }
   0xa   :  { %p1127_p3 = scmp.ne.s32.totalorder %s29_s19, %s1126_s27  ;;  %p1132_p5 = scmp.lt.s32.totalorder %s1126_s27, %s1126_s27 }
   0xc   :  { %p1133_p6 = por %p1132_p5, %p1131_p4 }
   0xe   :  { %p1134_p7 = pnand %p1133_p6, %p1127_p3 }
  0x10   :  { %1137 = shalt.err (!%p1134_p7)
}
  0x11   :  { %s1211_s28 = smov 384   ;;  %s1212_s29 = smov 24  }
  0x12   :  { %34 = dma.hbm_to_vmem [thread:$0]  %s1331_s1, 18432, %s29_s19, [#allocation6], %s1211_s28, %s1211_s28, %s1212_s29  }
  0x13   :  { %s1213_s7 = smov [#allocation2]   ;;  %s1214_s9 = smov [#allocation7]  }
  0x14   :  { %s19_s8 = sshll.u32 %s1213_s7, 4  ;;  %s42_s10 = sshll.u32 %s1214_s9, 4  ;;  %s20_s8 = int_to_ptr.vmem [resolvable:$true] %s19_s8  ;;  %s43_s10 = int_to_ptr.vmem [resolvable:$true] %s42_s10 }
  0x15   :  { %s1138_s13 = scalar_lea.hbm %s1330_s0, 384 }
  0x16   :  { %p1139_p8 = scmp.ne.s32.totalorder %s1330_s0, %s1138_s13  ;;  %p1142_p9 = scmp.lt.u32.totalorder %s1138_s13, %s1330_s0 }
  0x18   :  { %p1144_p10 = pnand %p1142_p9, %p1139_p8 }
  0x1a   :  { %1147 = shalt.err (!%p1144_p10)
}
  0x1b   :  { %s1148_s1 = scalar_lea.vmem %s20_s8, 384  ;;  %p1153_p12 = scmp.lt.s32.totalorder %s20_s8, %s20_s8 }
  0x1c   :  { %p1149_p11 = scmp.ne.s32.totalorder %s20_s8, %s1148_s1  ;;  %p1154_p13 = scmp.lt.s32.totalorder %s1148_s1, %s1148_s1 }
  0x1e   :  { %p1155_p0 = por %p1154_p13, %p1153_p12 }
  0x20   :  { %p1156_p1 = pnand %p1155_p0, %p1149_p11 }
  0x22   :  { %1159 = shalt.err (!%p1156_p1)
}
  0x23   :  { %22 = dma.hbm_to_vmem [thread:$0]  %s1330_s0, 384, %s20_s8, [#allocation3]  }
  0x24   :  { %s1160_s22 = scalar_lea.hbm %s1333_s3, 6144 }
  0x25   :  { %p1161_p2 = scmp.ne.s32.totalorder %s1333_s3, %s1160_s22  ;;  %p1164_p3 = scmp.lt.u32.totalorder %s1160_s22, %s1333_s3 }
  0x27   :  { %p1166_p4 = pnand %p1164_p3, %p1161_p2 }
  0x29   :  { %1169 = shalt.err (!%p1166_p4)
}
  0x2a   :  { %s1170_s27 = scalar_lea.vmem %s43_s10, 6144  ;;  %p1175_p6 = scmp.lt.s32.totalorder %s43_s10, %s43_s10 }
  0x2b   :  { %p1171_p5 = scmp.ne.s32.totalorder %s43_s10, %s1170_s27  ;;  %p1176_p7 = scmp.lt.s32.totalorder %s1170_s27, %s1170_s27 }
  0x2d   :  { %p1177_p8 = por %p1176_p7, %p1175_p6 }
  0x2f   :  { %p1178_p9 = pnand %p1177_p8, %p1171_p5 }
  0x31   :  { %1181 = shalt.err (!%p1178_p9)
}
  0x32   :  { %s1215_s0 = smov 128   ;;  %s1216_s28 = smov 8  }
  0x33   :  { %48 = dma.hbm_to_vmem [thread:$0]  %s1333_s3, 6144, %s43_s10, [#allocation6], %s1215_s0, %s1215_s0, %s1216_s28  }
  0x34   :  { %1204 = dma.done.wait [#allocation3], 384  }
  0x35   :  { %1205 = vsyncadd [#allocation3], 4294966912 }
  0x36   :  { %1206 = dma.done.wait [#allocation6], 24576  }
  0x37   :  { %1207 = vsyncadd [#allocation6], 4294942720  ;;  %v64_v0 = vld [vmem:[#allocation5 + $0x8] sm:$0xff]  ;;  %v67_v1 = vld [vmem:[#allocation5 + $0x20] sm:$0xff]  ;;  %vm1218_vm0 = vmmov 0   ;;  %s1220_s8 = smov [#allocation8]  }
  0x38   :  { %v63_v2 = vld [vmem:[#allocation5] sm:$0xff]  ;;  %v893_v3 = vpack.c.bf16 %v67_v1, %v64_v0  ;;  %v66_v4 = vld [vmem:[#allocation5 + $0x18] sm:$0xff]  ;;  %v73_v6 = vld [vmem:[#allocation5 + $0x50] sm:$0xff]  ;;  %s708_s9 = sshll.u32 %s1220_s8, 4  ;;  %s709_s9 = int_to_ptr.vmem [resolvable:$true] %s708_s9 }
  0x39   :  { %v70_v5 = vld [vmem:[#allocation5 + $0x38] sm:$0xff]  ;;  %v895_v7 = vpack.c.bf16 %v66_v4, %v63_v2  ;;  %v69_v9 = vld [vmem:[#allocation5 + $0x30] sm:$0xff]  ;;  %v72_v10 = vld [vmem:[#allocation5 + $0x48] sm:$0xff]  ;;  %s1182_s10 = scalar_lea.vmem %s709_s9, 128  ;;  %p1187_p11 = scmp.lt.s32.totalorder %s709_s9, %s709_s9 }
  0x3a   :  { %v897_v8 = vpack.c.bf16 %v73_v6, %v70_v5  ;;  %v76_v11 = vld [vmem:[#allocation5 + $0x68] sm:$0xff]  ;;  %894 = vmatprep.subr.bf16.mxu0 %v893_v3  ;;  %v79_v12 = vld [vmem:[#allocation5 + $0x80] sm:$0xff]  ;;  %v899_v13 = vpack.c.bf16 %v72_v10, %v69_v9  ;;  %v113_v15 = vld [vmem:[#allocation5 + $0x190] sm:$0xff]  ;;  %p1183_p10 = scmp.ne.s32.totalorder %s709_s9, %s1182_s10  ;;  %p1188_p12 = scmp.lt.s32.totalorder %s1182_s10, %s1182_s10 }
  0x3b   :  { %896 = vmatpush1.bf16.msra.mxu0 %v895_v7  ;;  %v75_v14 = vld [vmem:[#allocation5 + $0x60] sm:$0xff]  ;;  %v116_v16 = vld [vmem:[#allocation5 + $0x1a8] sm:$0xff]  ;;  %v901_v17 = vpack.c.bf16 %v79_v12, %v76_v11  ;;  %v78_v18 = vld [vmem:[#allocation5 + $0x78] sm:$0xff] }
  0x3c   :  { %898 = vmatprep.subr.bf16.mxu0 %v897_v8  ;;  %v989_v19 = vpack.c.bf16 %v116_v16, %v113_v15  ;;  %v65_v20 = vld [vmem:[#allocation5 + $0x10] sm:$0xff]  ;;  %v68_v21 = vld [vmem:[#allocation5 + $0x28] sm:$0xff]  ;;  %v82_v22 = vld [vmem:[#allocation5 + $0x98] sm:$0xff]  ;;  %v903_v27 = vpack.c.bf16 %v78_v18, %v75_v14  ;;  %p1189_p13 = por %p1188_p12, %p1187_p11 }
  0x3d   :  { %v85_v23 = vld [vmem:[#allocation5 + $0xb0] sm:$0xff]  ;;  %v991_v24 = vpack.c.bf16 %v68_v21, %v65_v20  ;;  %v119_v25 = vld [vmem:[#allocation5 + $0x1c0] sm:$0xff]  ;;  %v122_v26 = vld [vmem:[#allocation5 + $0x1d8] sm:$0xff] }
  0x3e   :  { %990 = vmatprep.subr.bf16.mxu1 %v989_v19  ;;  %v81_v28 = vld [vmem:[#allocation5 + $0x90] sm:$0xff]  ;;  %v993_v29 = vpack.c.bf16 %v122_v26, %v119_v25  ;;  %v71_v30 = vld [vmem:[#allocation5 + $0x40] sm:$0xff]  ;;  %v74_v31 = vld [vmem:[#allocation5 + $0x58] sm:$0xff]  ;;  %v905_v32 = vpack.c.bf16 %v85_v23, %v82_v22  ;;  %p1190_p0 = pnand %p1189_p13, %p1183_p10 }
  0x3f   :  { %900 = vmatpush1.bf16.msra.mxu0 %v899_v13  ;;  %992 = vmatpush3.bf16.msra.mxu1 %v991_v24  ;;  %v84_v33 = vld [vmem:[#allocation5 + $0xa8] sm:$0xff]  ;;  %v995_v34 = vpack.c.bf16 %v74_v31, %v71_v30  ;;  %v125_v35 = vld [vmem:[#allocation5 + $0x1f0] sm:$0xff]  ;;  %v91_v38 = vld [vmem:[#allocation5 + $0xe0] sm:$0xff] }
  0x40   :  { %902 = vmatprep.subr.bf16.mxu0 %v901_v17  ;;  %v128_v36 = vld [vmem:[#allocation5 + $0x208] sm:$0xff]  ;;  %994 = vmatprep.subr.bf16.mxu1 %v993_v29  ;;  %v77_v40 = vld [vmem:[#allocation5 + $0x70] sm:$0xff]  ;;  %v907_v42 = vpack.c.bf16 %v84_v33, %v81_v28  ;;  %v87_v43 = vld [vmem:[#allocation5 + $0xc0] sm:$0xff] }
  0x41   :  { %v88_v37 = vld [vmem:[#allocation5 + $0xc8] sm:$0xff]  ;;  %v997_v39 = vpack.c.bf16 %v128_v36, %v125_v35  ;;  %v131_v45 = vld [vmem:[#allocation5 + $0x220] sm:$0xff]  ;;  %v134_v46 = vld [vmem:[#allocation5 + $0x238] sm:$0xff] }
  0x42   :  { %v80_v41 = vld [vmem:[#allocation5 + $0x88] sm:$0xff]  ;;  %v909_v47 = vpack.c.bf16 %v91_v38, %v88_v37  ;;  %v90_v48 = vld [vmem:[#allocation5 + $0xd8] sm:$0xff]  ;;  %v1001_v49 = vpack.c.bf16 %v134_v46, %v131_v45  ;;  %v83_v50 = vld [vmem:[#allocation5 + $0xa0] sm:$0xff] }
  0x43   :  { %904 = vmatpush1.bf16.msra.mxu0 %v903_v27  ;;  %996 = vmatpush3.bf16.msra.mxu1 %v995_v34  ;;  %v999_v44 = vpack.c.bf16 %v80_v41, %v77_v40  ;;  %v86_v51 = vld [vmem:[#allocation5 + $0xb8] sm:$0xff]  ;;  %v97_v53 = vld [vmem:[#allocation5 + $0x110] sm:$0xff]  ;;  %v140_v55 = vld [vmem:[#allocation5 + $0x268] sm:$0xff]  ;;  %v911_v56 = vpack.c.bf16 %v90_v48, %v87_v43 }
  0x44   :  { %906 = vmatprep.subr.bf16.mxu0 %v905_v32  ;;  %998 = vmatprep.subr.bf16.mxu1 %v997_v39  ;;  %v94_v52 = vld [vmem:[#allocation5 + $0xf8] sm:$0xff]  ;;  %v137_v54 = vld [vmem:[#allocation5 + $0x250] sm:$0xff]  ;;  %v96_v58 = vld [vmem:[#allocation5 + $0x108] sm:$0xff]  ;;  %v1003_v59 = vpack.c.bf16 %v86_v51, %v83_v50 }
  0x45   :  { %v93_v57 = vld [vmem:[#allocation5 + $0xf0] sm:$0xff]  ;;  %v913_v60 = vpack.c.bf16 %v97_v53, %v94_v52  ;;  %v100_v61 = vld [vmem:[#allocation5 + $0x128] sm:$0xff]  ;;  %v1005_v62 = vpack.c.bf16 %v140_v55, %v137_v54  ;;  %v103_v1 = vld [vmem:[#allocation5 + $0x140] sm:$0xff]  ;;  %v1217_v54 = vmov 0.0|0.0  }
  0x46   :  { %v89_v63 = vld [vmem:[#allocation5 + $0xd0] sm:$0xff]  ;;  %v92_v0 = vld [vmem:[#allocation5 + $0xe8] sm:$0xff]  ;;  %v143_v2 = vld [vmem:[#allocation5 + $0x280] sm:$0xff]  ;;  %v915_v4 = vpack.c.bf16 %v96_v58, %v93_v57  ;;  %v917_v8 = vpack.c.bf16 %v103_v1, %v100_v61 }
  0x47   :  { %908 = vmatpush1.bf16.msra.mxu0 %v907_v42  ;;  %1000 = vmatpush3.bf16.msra.mxu1 %v999_v44  ;;  %v146_v3 = vld [vmem:[#allocation5 + $0x298] sm:$0xff]  ;;  %v99_v5 = vld [vmem:[#allocation5 + $0x120] sm:$0xff]  ;;  %v1007_v7 = vpack.c.bf16 %v92_v0, %v89_v63  ;;  %v109_v13 = vld [vmem:[#allocation5 + $0x170] sm:$0xff] }
  0x48   :  { %910 = vmatprep.subr.bf16.mxu0 %v909_v47  ;;  %1002 = vmatprep.subr.bf16.mxu1 %v1001_v49  ;;  %v102_v6 = vld [vmem:[#allocation5 + $0x138] sm:$0xff]  ;;  %v1009_v10 = vpack.c.bf16 %v146_v3, %v143_v2  ;;  %v95_v11 = vld [vmem:[#allocation5 + $0x100] sm:$0xff]  ;;  %v149_v14 = vld [vmem:[#allocation5 + $0x2b0] sm:$0xff] }
  0x49   :  { %v106_v9 = vld [vmem:[#allocation5 + $0x158] sm:$0xff]  ;;  %v152_v15 = vld [vmem:[#allocation5 + $0x2c8] sm:$0xff]  ;;  %v919_v16 = vpack.c.bf16 %v102_v6, %v99_v5  ;;  %v105_v17 = vld [vmem:[#allocation5 + $0x150] sm:$0xff] }
  0x4a   :  { %v98_v12 = vld [vmem:[#allocation5 + $0x118] sm:$0xff]  ;;  %v108_v18 = vld [vmem:[#allocation5 + $0x168] sm:$0xff]  ;;  %v921_v21 = vpack.c.bf16 %v109_v13, %v106_v9  ;;  %v1013_v22 = vpack.c.bf16 %v152_v15, %v149_v14  ;;  %v101_v23 = vld [vmem:[#allocation5 + $0x130] sm:$0xff] }
  0x4b   :  { %912 = vmatpush1.bf16.msra.mxu0 %v911_v56  ;;  %1004 = vmatpush3.bf16.msra.mxu1 %v1003_v59  ;;  %v112_v19 = vld [vmem:[#allocation5 + $0x188] sm:$0xff]  ;;  %v1011_v20 = vpack.c.bf16 %v98_v12, %v95_v11  ;;  %v61_v25 = vld [vmem:[#allocation2 + $0x8] sm:$0xff]  ;;  %v115_v26 = vld [vmem:[#allocation5 + $0x1a0] sm:$0xff]  ;;  %v923_v29 = vpack.c.bf16 %v108_v18, %v105_v17 }
  0x4c   :  { %914 = vmatprep.subr.bf16.mxu0 %v913_v60  ;;  %1006 = vmatprep.subr.bf16.mxu1 %v1005_v62  ;;  %v104_v24 = vld [vmem:[#allocation5 + $0x148] sm:$0xff]  ;;  %v155_v27 = vld [vmem:[#allocation5 + $0x2e0] sm:$0xff]  ;;  %v158_v28 = vld [vmem:[#allocation5 + $0x2f8] sm:$0xff]  ;;  %v925_v32 = vpack.c.bf16 %v115_v26, %v112_v19 }
  0x4d   :  { %430 = vmatprep.mubr.f32.mxu1 %v61_v25  ;;  %288 = vmatprep.mubr.f32.mxu0 %v61_v25  ;;  %v111_v30 = vld [vmem:[#allocation5 + $0x180] sm:$0xff]  ;;  %v1015_v31 = vpack.c.bf16 %v104_v24, %v101_v23  ;;  %v114_v33 = vld [vmem:[#allocation5 + $0x198] sm:$0xff]  ;;  %v1017_v34 = vpack.c.bf16 %v158_v28, %v155_v27  ;;  %v121_v38 = vld [vmem:[#allocation5 + $0x1d0] sm:$0xff] }
  0x4e   :  { %v107_v35 = vld [vmem:[#allocation5 + $0x160] sm:$0xff]  ;;  %v110_v36 = vld [vmem:[#allocation5 + $0x178] sm:$0xff]  ;;  %v927_v39 = vpack.c.bf16 %v114_v33, %v111_v30  ;;  %v117_v40 = vld [vmem:[#allocation5 + $0x1b0] sm:$0xff] }
  0x4f   :  { %916 = vmatpush1.bf16.msra.mxu0 %v915_v4  ;;  %1008 = vmatpush3.bf16.msra.mxu1 %v1007_v7  ;;  %v118_v37 = vld [vmem:[#allocation5 + $0x1b8] sm:$0xff]  ;;  %v1019_v41 = vpack.c.bf16 %v110_v36, %v107_v35  ;;  %v120_v43 = vld [vmem:[#allocation5 + $0x1c8] sm:$0xff]  ;;  %v161_v44 = vld [vmem:[#allocation5 + $0x310] sm:$0xff]  ;;  %v1219_v4 = vmov 0.0  }
  0x50   :  { %918 = vmatprep.subr.bf16.mxu0 %v917_v8  ;;  %1010 = vmatprep.subr.bf16.mxu1 %v1009_v10  ;;  %v929_v42 = vpack.c.bf16 %v121_v38, %v118_v37  ;;  %v164_v45 = vld [vmem:[#allocation5 + $0x328] sm:$0xff]  ;;  %v127_v47 = vld [vmem:[#allocation5 + $0x200] sm:$0xff]  ;;  %v931_v48 = vpack.c.bf16 %v120_v43, %v117_v40  ;;  %v126_v53 = vld [vmem:[#allocation5 + $0x1f8] sm:$0xff] }
  0x51   :  { %v124_v46 = vld [vmem:[#allocation5 + $0x1e8] sm:$0xff]  ;;  %v123_v49 = vld [vmem:[#allocation5 + $0x1e0] sm:$0xff]  ;;  %v1022_v51 = vpack.c.bf16 %v164_v45, %v161_v44  ;;  %v170_v56 = vld [vmem:[#allocation5 + $0x358] sm:$0xff] }
  0x52   :  { %v1287_v50 = vld [vmem:[#allocation2] sm:$0xff]  ;;  %v933_v52 = vpack.c.bf16 %v127_v47, %v124_v46  ;;  %v167_v55 = vld [vmem:[#allocation5 + $0x340] sm:$0xff]  ;;  %v130_v57 = vld [vmem:[#allocation5 + $0x218] sm:$0xff]  ;;  %v935_v59 = vpack.c.bf16 %v126_v53, %v123_v49 }
  0x53   :  { %920 = vmatpush1.bf16.msra.mxu0 %v919_v16  ;;  %1012 = vmatpush3.bf16.msra.mxu1 %v1011_v20  ;;  %v133_v58 = vld [vmem:[#allocation5 + $0x230] sm:$0xff]  ;;  %v1025_v61 = vpack.c.bf16 %v170_v56, %v167_v55  ;;  %v132_v63 = vld [vmem:[#allocation5 + $0x228] sm:$0xff]  ;;  %v139_v3 = vld [vmem:[#allocation5 + $0x260] sm:$0xff] }
  0x54   :  { %922 = vmatprep.subr.bf16.mxu0 %v921_v21  ;;  %1014 = vmatprep.subr.bf16.mxu1 %v1013_v22  ;;  %v129_v60 = vld [vmem:[#allocation5 + $0x210] sm:$0xff]  ;;  %v937_v62 = vpack.c.bf16 %v133_v58, %v130_v57  ;;  %v176_v1 = vld [vmem:[#allocation5 + $0x388] sm:$0xff]  ;;  %v135_v6 = vld [vmem:[#allocation5 + $0x240] sm:$0xff] }
  0x55   :  { %v173_v0 = vld [vmem:[#allocation5 + $0x370] sm:$0xff]  ;;  %v136_v2 = vld [vmem:[#allocation5 + $0x248] sm:$0xff]  ;;  %v939_v5 = vpack.c.bf16 %v132_v63, %v129_v60  ;;  %v138_v9 = vld [vmem:[#allocation5 + $0x258] sm:$0xff] }
  0x56   :  { %v1028_v7 = vpack.c.bf16 %v176_v1, %v173_v0  ;;  %v941_v8 = vpack.c.bf16 %v139_v3, %v136_v2  ;;  %v179_v10 = vld [vmem:[#allocation5 + $0x3a0] sm:$0xff]  ;;  %v182_v11 = vld [vmem:[#allocation5 + $0x3b8] sm:$0xff]  ;;  %v145_v13 = vld [vmem:[#allocation5 + $0x290] sm:$0xff]  ;;  %v943_v14 = vpack.c.bf16 %v138_v9, %v135_v6 }
  0x57   :  { %924 = vmatpush1.bf16.msra.mxu0 %v923_v29  ;;  %1016 = vmatpush3.bf16.msra.mxu1 %v1015_v31  ;;  %v142_v12 = vld [vmem:[#allocation5 + $0x278] sm:$0xff]  ;;  %v141_v15 = vld [vmem:[#allocation5 + $0x270] sm:$0xff]  ;;  %v1031_v16 = vpack.c.bf16 %v182_v11, %v179_v10  ;;  %v144_v18 = vld [vmem:[#allocation5 + $0x288] sm:$0xff] }
  0x58   :  { %926 = vmatprep.subr.bf16.mxu0 %v925_v32  ;;  %1018 = vmatprep.subr.bf16.mxu1 %v1017_v34  ;;  %v945_v17 = vpack.c.bf16 %v145_v13, %v142_v12  ;;  %v185_v19 = vld [vmem:[#allocation5 + $0x3d0] sm:$0xff]  ;;  %v188_v20 = vld [vmem:[#allocation5 + $0x3e8] sm:$0xff]  ;;  %v151_v22 = vld [vmem:[#allocation5 + $0x2c0] sm:$0xff]  ;;  %v947_v23 = vpack.c.bf16 %v144_v18, %v141_v15 }
  0x59   :  { %v148_v21 = vld [vmem:[#allocation5 + $0x2a8] sm:$0xff]  ;;  %v147_v24 = vld [vmem:[#allocation5 + $0x2a0] sm:$0xff]  ;;  %v1034_v25 = vpack.c.bf16 %v188_v20, %v185_v19  ;;  %v150_v27 = vld [vmem:[#allocation5 + $0x2b8] sm:$0xff] }
  0x5a   :  { %v949_v26 = vpack.c.bf16 %v151_v22, %v148_v21  ;;  %v191_v28 = vld [vmem:[#allocation5 + $0x400] sm:$0xff]  ;;  %v194_v29 = vld [vmem:[#allocation5 + $0x418] sm:$0xff]  ;;  %v157_v31 = vld [vmem:[#allocation5 + $0x2f0] sm:$0xff]  ;;  %v951_v32 = vpack.c.bf16 %v150_v27, %v147_v24 }
  0x5b   :  { %928 = vmatpush1.bf16.msra.mxu0 %v927_v39  ;;  %1020 = vmatpush3.bf16.msra.mxu1 %v1019_v41  ;;  %v154_v30 = vld [vmem:[#allocation5 + $0x2d8] sm:$0xff]  ;;  %v153_v33 = vld [vmem:[#allocation5 + $0x2d0] sm:$0xff]  ;;  %v1037_v34 = vpack.c.bf16 %v194_v29, %v191_v28  ;;  %v156_v36 = vld [vmem:[#allocation5 + $0x2e8] sm:$0xff] }
  0x5c   :  { %930 = vmatprep.subr.bf16.mxu0 %v929_v42  ;;  %1021 = vmatprep.subr.bf16.mxu1 %v1217_v54  ;;  %v953_v35 = vpack.c.bf16 %v157_v31, %v154_v30  ;;  %v197_v37 = vld [vmem:[#allocation5 + $0x430] sm:$0xff]  ;;  %v200_v38 = vld [vmem:[#allocation5 + $0x448] sm:$0xff]  ;;  %v163_v40 = vld [vmem:[#allocation5 + $0x320] sm:$0xff]  ;;  %v955_v41 = vpack.c.bf16 %v156_v36, %v153_v33 }
  0x5d   :  { %v160_v39 = vld [vmem:[#allocation5 + $0x308] sm:$0xff]  ;;  %v159_v42 = vld [vmem:[#allocation5 + $0x300] sm:$0xff]  ;;  %v1040_v43 = vpack.c.bf16 %v200_v38, %v197_v37  ;;  %v162_v45 = vld [vmem:[#allocation5 + $0x318] sm:$0xff] }
  0x5e   :  { %431 = vmatmul.mubr.f32.vlgmr.msra.gmra.mrb[0].mxu1 %v1287_v50  ;;  %v957_v44 = vpack.c.bf16 %v163_v40, %v160_v39  ;;  %v203_v46 = vld [vmem:[#allocation5 + $0x460] sm:$0xff]  ;;  %v206_v47 = vld [vmem:[#allocation5 + $0x478] sm:$0xff]  ;;  %v169_v49 = vld [vmem:[#allocation5 + $0x350] sm:$0xff]  ;;  %v959_v53 = vpack.c.bf16 %v162_v45, %v159_v42 }
  0x5f   :  { %932 = vmatpush1.bf16.msra.mxu0 %v931_v48  ;;  %1023 = vmatpush3.bf16.msra.mxu1 %v1022_v51  ;;  %v166_v48 = vld [vmem:[#allocation5 + $0x338] sm:$0xff]  ;;  %v522_v51 = vld [vmem:[#allocation7 + $0x80] sm:$0xff]  ;;  %v1043_v55 = vpack.c.bf16 %v206_v47, %v203_v46  ;;  %v165_v57 = vld [vmem:[#allocation5 + $0x330] sm:$0xff] }
  0x60   :  { %934 = vmatprep.subr.bf16.mxu0 %v933_v52  ;;  %1024 = vmatprep.subr.bf16.mxu1 %v1217_v54  ;;  %v523_v52 = vld [vmem:[#allocation7 + $0x88] sm:$0xff]  ;;  %v961_v56 = vpack.c.bf16 %v169_v49, %v166_v48  ;;  %v175_v60 = vld [vmem:[#allocation5 + $0x380] sm:$0xff]  ;;  %v62_v63 = vld [vmem:[#allocation2 + $0x10] sm:$0xff] }
  0x61   :  { %855 = vmatprep.mubr.msk.f32.mxu1 %vm1218_vm0, %v1219_v4  ;;  %v168_v58 = vld [vmem:[#allocation5 + $0x348] sm:$0xff]  ;;  %v171_v1 = vld [vmem:[#allocation5 + $0x360] sm:$0xff]  ;;  %v174_v2 = vld [vmem:[#allocation5 + $0x378] sm:$0xff] }
  0x62   :  { %v178_v3 = vld [vmem:[#allocation5 + $0x398] sm:$0xff]  ;;  %v967_v6 = vpack.c.bf16 %v174_v2, %v171_v1  ;;  %v184_v9 = vld [vmem:[#allocation5 + $0x3c8] sm:$0xff]  ;;  %v187_v10 = vld [vmem:[#allocation5 + $0x3e0] sm:$0xff] }
  0x63   :  { %936 = vmatpush1.bf16.msra.mxu0 %v935_v59  ;;  %1026 = vmatpush3.bf16.msra.mxu1 %v1025_v61  ;;  %v172_v59 = vld [vmem:[#allocation5 + $0x368] sm:$0xff]  ;;  %v1045_v61 = vpack.c.bf16 %v523_v52, %v522_v51  ;;  %v973_v12 = vpack.c.bf16 %v187_v10, %v184_v9  ;;  %v183_v13 = vld [vmem:[#allocation5 + $0x3c0] sm:$0xff]  ;;  %v190_v15 = vld [vmem:[#allocation5 + $0x3f8] sm:$0xff] }
  0x64   :  { %938 = vmatprep.subr.bf16.mxu0 %v937_v62  ;;  %1027 = vmatprep.subr.bf16.mxu1 %v1217_v54  ;;  %v963_v62 = vpack.c.bf16 %v168_v58, %v165_v57  ;;  %v965_v0 = vpack.c.bf16 %v175_v60, %v172_v59  ;;  %v189_v19 = vld [vmem:[#allocation5 + $0x3f0] sm:$0xff]  ;;  %v192_v20 = vld [vmem:[#allocation5 + $0x408] sm:$0xff]  ;;  %v199_v22 = vld [vmem:[#allocation5 + $0x440] sm:$0xff] }
  0x65   :  { %v196_v21 = vld [vmem:[#allocation5 + $0x428] sm:$0xff]  ;;  %v202_v27 = vld [vmem:[#allocation5 + $0x458] sm:$0xff]  ;;  %v205_v28 = vld [vmem:[#allocation5 + $0x470] sm:$0xff] }
  0x66   :  { %v981_v24 = vpack.c.bf16 %v199_v22, %v196_v21  ;;  %v985_v30 = vpack.c.bf16 %v205_v28, %v202_v27  ;;  %v201_v31 = vld [vmem:[#allocation5 + $0x450] sm:$0xff]  ;;  %v541_v38 = vld [vmem:[#allocation7 + $0x118] sm:$0xff]  ;;  %v542_v40 = vld [vmem:[#allocation7 + $0x120] sm:$0xff] }
  0x67   :  { %940 = vmatpush1.bf16.msra.mxu0 %v939_v5  ;;  %1029 = vmatpush3.bf16.msra.mxu1 %v1028_v7  ;;  %v181_v5 = vld [vmem:[#allocation5 + $0x3b0] sm:$0xff]  ;;  %v546_v46 = vld [vmem:[#allocation7 + $0x140] sm:$0xff]  ;;  %v547_v47 = vld [vmem:[#allocation7 + $0x148] sm:$0xff] }
  0x68   :  { %942 = vmatprep.subr.bf16.mxu0 %v941_v8  ;;  %1030 = vmatprep.subr.bf16.mxu1 %v1217_v54  ;;  %v969_v7 = vpack.c.bf16 %v181_v5, %v178_v3  ;;  %v177_v8 = vld [vmem:[#allocation5 + $0x390] sm:$0xff]  ;;  %v1090_v48 = vpack.c.bf16 %v547_v47, %v546_v46  ;;  %v549_v49 = vld [vmem:[#allocation7 + $0x158] sm:$0xff]  ;;  %v506_v52 = vld [vmem:[#allocation7] sm:$0xff] }
  0x69   :  { %v540_v37 = vld [vmem:[#allocation7 + $0x110] sm:$0xff]  ;;  %v551_v57 = vld [vmem:[#allocation7 + $0x168] sm:$0xff]  ;;  %v525_v60 = vld [vmem:[#allocation7 + $0x98] sm:$0xff] }
  0x6a   :  { %v1081_v39 = vpack.c.bf16 %v541_v38, %v540_v37  ;;  %v524_v58 = vld [vmem:[#allocation7 + $0x90] sm:$0xff]  ;;  %v553_v2 = vld [vmem:[#allocation7 + $0x178] sm:$0xff]  ;;  %v526_v3 = vld [vmem:[#allocation7 + $0xa0] sm:$0xff] }
  0x6b   :  { %944 = vmatpush1.bf16.msra.mxu0 %v943_v14  ;;  %1032 = vmatpush3.bf16.msra.mxu1 %v1031_v16  ;;  %v186_v14 = vld [vmem:[#allocation5 + $0x3d8] sm:$0xff]  ;;  %v193_v16 = vld [vmem:[#allocation5 + $0x410] sm:$0xff]  ;;  %v535_v27 = vld [vmem:[#allocation7 + $0xe8] sm:$0xff] }
  0x6c   :  { %946 = vmatprep.subr.bf16.mxu0 %v945_v17  ;;  %1033 = vmatprep.subr.bf16.mxu1 %v1217_v54  ;;  %v975_v17 = vpack.c.bf16 %v186_v14, %v183_v13  ;;  %v977_v18 = vpack.c.bf16 %v193_v16, %v190_v15  ;;  %v552_v1 = vld [vmem:[#allocation7 + $0x170] sm:$0xff]  ;;  %v513_v14 = vld [vmem:[#allocation7 + $0x38] sm:$0xff]  ;;  %v530_v15 = vld [vmem:[#allocation7 + $0xc0] sm:$0xff] }
  0x6d   :  { %v1099_v5 = vpack.c.bf16 %v553_v2, %v552_v1  ;;  %v528_v10 = vld [vmem:[#allocation7 + $0xb0] sm:$0xff]  ;;  %v531_v16 = vld [vmem:[#allocation7 + $0xc8] sm:$0xff]  ;;  %v533_v21 = vld [vmem:[#allocation7 + $0xd8] sm:$0xff] }
  0x6e   :  { %v521_v37 = vld [vmem:[#allocation7 + $0x78] sm:$0xff] }
  0x6f   :  { %948 = vmatpush1.bf16.msra.mxu0 %v947_v23  ;;  %1035 = vmatpush3.bf16.msra.mxu1 %v1034_v25  ;;  %v979_v23 = vpack.c.bf16 %v192_v20, %v189_v19  ;;  %v195_v25 = vld [vmem:[#allocation5 + $0x420] sm:$0xff]  ;;  %v515_v19 = vld [vmem:[#allocation7 + $0x48] sm:$0xff]  ;;  %v532_v20 = vld [vmem:[#allocation7 + $0xd0] sm:$0xff] }
  0x70   :  { %950 = vmatprep.subr.bf16.mxu0 %v949_v26  ;;  %1036 = vmatprep.subr.bf16.mxu1 %v1217_v54  ;;  %v198_v26 = vld [vmem:[#allocation5 + $0x438] sm:$0xff] }
  0x71   :  { %v983_v29 = vpack.c.bf16 %v198_v26, %v195_v25  ;;  %v517_v25 = vld [vmem:[#allocation7 + $0x58] sm:$0xff]  ;;  %v534_v26 = vld [vmem:[#allocation7 + $0xe0] sm:$0xff] }
  0x73   :  { %952 = vmatpush1.bf16.msra.mxu0 %v951_v32  ;;  %1038 = vmatpush3.bf16.msra.mxu1 %v1037_v34  ;;  %v204_v32 = vld [vmem:[#allocation5 + $0x468] sm:$0xff]  ;;  %v538_v34 = vld [vmem:[#allocation7 + $0x100] sm:$0xff] }
  0x74   :  { %954 = vmatprep.subr.bf16.mxu0 %v953_v35  ;;  %1039 = vmatprep.subr.bf16.mxu1 %v1217_v54  ;;  %v987_v33 = vpack.c.bf16 %v204_v32, %v201_v31  ;;  %v539_v35 = vld [vmem:[#allocation7 + $0x108] sm:$0xff] }
  0x75   :  { %v1078_v36 = vpack.c.bf16 %v539_v35, %v538_v34  ;;  %v519_v31 = vld [vmem:[#allocation7 + $0x68] sm:$0xff]  ;;  %v537_v34 = vld [vmem:[#allocation7 + $0xf8] sm:$0xff] }
  0x77   :  { %956 = vmatpush1.bf16.msra.mxu0 %v955_v41  ;;  %1041 = vmatpush3.bf16.msra.mxu1 %v1040_v43  ;;  %v543_v41 = vld [vmem:[#allocation7 + $0x128] sm:$0xff]  ;;  %v544_v43 = vld [vmem:[#allocation7 + $0x130] sm:$0xff] }
  0x78   :  { %958 = vmatprep.subr.bf16.mxu0 %v957_v44  ;;  %1042 = vmatprep.subr.bf16.mxu1 %v1217_v54  ;;  %v1084_v42 = vpack.c.bf16 %v543_v41, %v542_v40  ;;  %v545_v44 = vld [vmem:[#allocation7 + $0x138] sm:$0xff] }
  0x79   :  { %v1087_v45 = vpack.c.bf16 %v545_v44, %v544_v43 }
  0x7a   :  { %289 = vmatmul.mubr.f32.vlgmr.msra.gmra.mrb[0].mxu0 %v1287_v50  ;;  %v180_v50 = vld [vmem:[#allocation5 + $0x3a8] sm:$0xff] }
  0x7b   :  { %960 = vmatpush1.bf16.msra.mxu0 %v959_v53  ;;  %1044 = vmatpush3.bf16.msra.mxu1 %v1043_v55  ;;  %v971_v11 = vpack.c.bf16 %v180_v50, %v177_v8  ;;  %v507_v53 = vld [vmem:[#allocation7 + $0x8] sm:$0xff] }
  0x7c   :  { %962 = vmatprep.subr.bf16.mxu0 %v961_v56  ;;  %359 = vmatprep.mubr.f32.mxu0 %v1219_v4  ;;  %v1047_v55 = vpack.c.bf16 %v507_v53, %v506_v52  ;;  %v550_v56 = vld [vmem:[#allocation7 + $0x160] sm:$0xff]  ;;  %v511_v8 = vld [vmem:[#allocation7 + $0x28] sm:$0xff] }
  0x7d   :  { %1046 = vmatprep.subr.bf16.mxu1 %v1045_v61  ;;  %v1096_v59 = vpack.c.bf16 %v551_v57, %v550_v56  ;;  %v508_v61 = vld [vmem:[#allocation7 + $0x10] sm:$0xff] }
  0x7e   :  { %856 = vmatmul.mubr.f32.vlgmr.msra.gmra.mrb[2].mxu1 %v62_v63 }
  0x7f   :  { %964 = vmatpush1.bf16.msra.mxu0 %v963_v62  ;;  %1048 = vmatpush3.bf16.msra.mxu1 %v1047_v55  ;;  %v509_v62 = vld [vmem:[#allocation7 + $0x18] sm:$0xff] }
  0x80   :  { %966 = vmatprep.subr.bf16.mxu0 %v965_v0  ;;  %v1051_v0 = vpack.c.bf16 %v509_v62, %v508_v61 }
  0x83   :  { %968 = vmatpush1.bf16.msra.mxu0 %v967_v6  ;;  %v527_v6 = vld [vmem:[#allocation7 + $0xa8] sm:$0xff] }
  0x84   :  { %970 = vmatprep.subr.bf16.mxu0 %v969_v7  ;;  %v510_v7 = vld [vmem:[#allocation7 + $0x20] sm:$0xff]  ;;  %v1053_v50 = vpack.c.bf16 %v527_v6, %v526_v3 }
  0x85   :  { %v1055_v9 = vpack.c.bf16 %v511_v8, %v510_v7 }
  0x87   :  { %972 = vmatpush1.bf16.msra.mxu0 %v971_v11  ;;  %v529_v11 = vld [vmem:[#allocation7 + $0xb8] sm:$0xff] }
  0x88   :  { %974 = vmatprep.subr.bf16.mxu0 %v973_v12  ;;  %v512_v12 = vld [vmem:[#allocation7 + $0x30] sm:$0xff]  ;;  %v1057_v13 = vpack.c.bf16 %v529_v11, %v528_v10 }
  0x8b   :  { %976 = vmatpush1.bf16.msra.mxu0 %v975_v17  ;;  %v1061_v17 = vpack.c.bf16 %v531_v16, %v530_v15 }
  0x8c   :  { %978 = vmatprep.subr.bf16.mxu0 %v977_v18  ;;  %v514_v18 = vld [vmem:[#allocation7 + $0x40] sm:$0xff] }
  0x8d   :  { %v1063_v22 = vpack.c.bf16 %v515_v19, %v514_v18 }
  0x8f   :  { %980 = vmatpush1.bf16.msra.mxu0 %v979_v23  ;;  %v1065_v23 = vpack.c.bf16 %v533_v21, %v532_v20 }
  0x90   :  { %982 = vmatprep.subr.bf16.mxu0 %v981_v24  ;;  %v516_v24 = vld [vmem:[#allocation7 + $0x50] sm:$0xff] }
  0x91   :  { %v1067_v28 = vpack.c.bf16 %v517_v25, %v516_v24 }
  0x93   :  { %984 = vmatpush1.bf16.msra.mxu0 %v983_v29  ;;  %v1069_v29 = vpack.c.bf16 %v535_v27, %v534_v26 }
  0x94   :  { %986 = vmatprep.subr.bf16.mxu0 %v985_v30  ;;  %v518_v30 = vld [vmem:[#allocation7 + $0x60] sm:$0xff] }
  0x95   :  { %v1071_v32 = vpack.c.bf16 %v519_v31, %v518_v30 }
  0x97   :  { %988 = vmatpush1.bf16.msra.mxu0 %v987_v33  ;;  %v536_v33 = vld [vmem:[#allocation7 + $0xf0] sm:$0xff] }
  0x98   :  { %1077 = vmatprep.subr.bf16.mxu0 %v1217_v54  ;;  %v1073_v35 = vpack.c.bf16 %v537_v34, %v536_v33 }
  0x9a   :  { %360 = vmatmul.mubr.f32.vlgmr.msra.gmra.mrb[0].mxu0 %v62_v63  ;;  %v1049_v63 = vpack.c.bf16 %v525_v60, %v524_v58 }
  0x9b   :  { %1079 = vmatpush3.bf16.msra.mxu0 %v1078_v36  ;;  %890 = vmatprep.mubr.msk.f32.mxu0 %vm1218_vm0, %v1219_v4  ;;  %v548_v4 = vld [vmem:[#allocation7 + $0x150] sm:$0xff] }
  0x9c   :  { %1080 = vmatprep.subr.bf16.mxu0 %v1217_v54  ;;  %v1093_v51 = vpack.c.bf16 %v549_v49, %v548_v4  ;;  %1050 = vmatprep.subr.bf16.mxu1 %v1049_v63  ;;  %v520_v36 = vld [vmem:[#allocation7 + $0x70] sm:$0xff]  ;;  %v718_v63 = vld [vmem:[%s1334_s4] ss:$0 sm:$0xff] }
  0x9d   :  { %1052 = vmatpush3.bf16.msra.mxu1 %v1051_v0  ;;  %v1075_v38 = vpack.c.bf16 %v521_v37, %v520_v36 }
  0x9e   :  { %1054 = vmatprep.subr.bf16.mxu1 %v1053_v50 }
  0x9f   :  { %1082 = vmatpush3.bf16.msra.mxu0 %v1081_v39 }
  0xa0   :  { %1083 = vmatprep.subr.bf16.mxu0 %v1217_v54 }
  0xa1   :  { %1056 = vmatpush3.bf16.msra.mxu1 %v1055_v9 }
  0xa2   :  { %1058 = vmatprep.subr.bf16.mxu1 %v1057_v13 }
  0xa3   :  { %1085 = vmatpush3.bf16.msra.mxu0 %v1084_v42  ;;  %v209_v42 = vlaneseq }
  0xa4   :  { %1086 = vmatprep.subr.bf16.mxu0 %v1217_v54 }
  0xa5   :  { %v210_v43 = vshrl.u32 %v209_v42, 7 }
  0xa7   :  { %1088 = vmatpush3.bf16.msra.mxu0 %v1087_v45  ;;  %v219_v44 = vsub.s32 2, %v210_v43  ;;  %v207_v45 = vld [vmem:[%s1332_s2] sm:$0x7]  ;;  %v211_v52 = vsub.s32 0, %v210_v43 }
  0xa8   :  { %1089 = vmatprep.subr.bf16.mxu0 %v1217_v54 }
  0xa9   :  { %v220_v46 = vrot.slane %v207_v45, %v219_v44  ;;  %v212_v55 = vrot.slane %v207_v45, %v211_v52 }
  0xab   :  { %1091 = vmatpush3.bf16.msra.mxu0 %v1090_v48 }
  0xac   :  { %1092 = vmatprep.subr.bf16.mxu0 %v1217_v54 }
  0xaf   :  { %1094 = vmatpush3.bf16.msra.mxu0 %v1093_v51  ;;  %v215_v51 = vsub.s32 1, %v210_v43 }
  0xb0   :  { %1095 = vmatprep.subr.bf16.mxu0 %v1217_v54 }
  0xb1   :  { %v216_v53 = vrot.slane %v207_v45, %v215_v51 }
  0xb3   :  { %1097 = vmatpush3.bf16.msra.mxu0 %v1096_v59 }
  0xb4   :  { %1098 = vmatprep.subr.bf16.mxu0 %v1217_v54  ;;  %v1059_v54 = vpack.c.bf16 %v513_v14, %v512_v12 }
  0xb6   :  { %1060 = vmatpush3.bf16.msra.mxu1 %v1059_v54 }
  0xb7   :  { %1100 = vmatpush3.bf16.msra.mxu0 %v1099_v5  ;;  %1062 = vmatprep.subr.bf16.mxu1 %v1061_v17 }
  0xba   :  { %1064 = vmatpush3.bf16.msra.mxu1 %v1063_v22 }
  0xbb   :  { %1066 = vmatprep.subr.bf16.mxu1 %v1065_v23 }
  0xbe   :  { %1068 = vmatpush3.bf16.msra.mxu1 %v1067_v28 }
  0xbf   :  { %1070 = vmatprep.subr.bf16.mxu1 %v1069_v29 }
  0xc2   :  { %1072 = vmatpush3.bf16.msra.mxu1 %v1071_v32 }
  0xc3   :  { %1074 = vmatprep.subr.bf16.mxu1 %v1073_v35 }
  0xc6   :  { %1076 = vmatpush3.bf16.msra.mxu1 %v1075_v38 }
 0x131   :  { %v751_v39 = vpop.f32.mrb[0].mxu1 }
 0x132   :  { %v752_v40 = vpop.f32.mrb[1].mxu1 }
 0x133   :  { %v753_v41 = vadd.f32 %v752_v40, %v751_v39 }
 0x135   :  { %v433_v47 = vadd.f32 %v753_v41, %v220_v46 }
 0x151   :  { %v502_v48 = vpop.f32.mrb[2].mxu1 }
 0x152   :  { %v503_v4 = vadd.f32 %v502_v48, %v433_v47  ;;  %v857_v49 = vpop.f32.mrb[3].mxu1 }
 0x154   :  { %891 = vmatmul.mubr.f32.vlgmr.msra.gmra.mrb[2].mxu0 %v503_v4 }
 0x16d   :  { %v361_v56 = vpop.f32.mrb[0].mxu0 }
 0x16e   :  { %v363_v57 = vpop.f32.mrb[1].mxu0  ;;  %v1101_v59 = vadd.f32 %v361_v56, %v212_v55 }
 0x16f   :  { %v1102_v58 = vadd.f32 %v363_v57, %v216_v53 }
 0x171   :  { %625 = vmatprep.mubr.f32.mxu1 %v1102_v58 }
 0x172   :  { %626 = vmatmul.mubr.f32.vlgmr.msra.gmra.mrb[4].mxu1 %v1101_v59 }
 0x227   :  { %v697_v60 = vpop.f32.mrb[2].mxu0 }
 0x228   :  { %v892_v61 = vpop.f32.mrb[3].mxu0 }
 0x245   :  { %v803_v62 = vpop.f32.mrb[4].mxu1 }
 0x246   :  { %v804_v0 = vpop.f32.mrb[5].mxu1 }
 0x247   :  { %v805_v1 = vadd.f32 %v804_v0, %v803_v62 }
 0x249   :  { %v628_v2 = vadd.f32 %v805_v1, %v718_v63 }
 0x24b   :  { %v698_v3 = vadd.f32 %v697_v60, %v628_v2 }
 0x24d   :  { %701 = vst [vmem:[#allocation8] sm:$0xff] %v698_v3 }
 0x24e   :  { %1193 = shalt.err (!%p1190_p0)
}
 0x24f   :  { %s1194_s13 = scalar_lea.hbm %s1335_s5, 128 }
 0x250   :  { %p1195_p1 = scmp.ne.s32.totalorder %s1335_s5, %s1194_s13  ;;  %p1198_p2 = scmp.lt.u32.totalorder %s1194_s13, %s1335_s5 }
 0x252   :  { %p1200_p3 = pnand %p1198_p2, %p1195_p1 }
 0x254   :  { %1203 = shalt.err (!%p1200_p3)
}
 0x255   :  { %711 = dma.vmem_to_hbm [thread:$0]  %s709_s9, 128, %s1335_s5, [#allocation4]  }
 0x256   :  { %1208 = dma.done.wait [#allocation4], 128  }
 0x257   :  { %1209 = vsyncadd [#allocation4], 4294967168 }
 0x258   :  { %715 = vsyncpa [#allocation3], 1 }
 0x259   :  { %716 = vsyncpa [#allocation6], 1 }
 0x25a   :  { %717 = vsyncpa [#allocation4], 1 }

</bundles_post_ra>
